<compile_context>
chip_gen: v5e
topology: v5e:2x2
jax: 0.10.0
libtpu: 0.0.40
codegen_flags: <defaults>
</compile_context>

<pallas_src>
import functools

import jax
import jax.numpy as jnp
from jax.experimental import pallas as pl
from jax.experimental.pallas import tpu as pltpu

_HIDDEN_PAD = 128  # pad hidden=10 up to one full lane-dense vreg row


def _mlp_kernel(x_ref, w1_ref, b1_ref, w2_ref, b2_ref, o_ref):
    # fc1 on the MXU: (TB, d_in) @ (d_in, 128) -> (TB, 128)  (batch in sublanes).
    h = jnp.dot(x_ref[...], w1_ref[...], preferred_element_type=jnp.float32)
    # Bias + ReLU on the VPU, fully lane-dense (128 lanes).  Padded lanes hold
    # zeros in w1/b1/w2, so they contribute nothing downstream.
    h = jnp.maximum(h + b1_ref[...], 0.0)
    # fc2 as a transposed matvec: (1, 128) . (TB, 128)^T -> (1, TB).
    # The output row is lane-dense in batch -> unmasked full-lane store.
    y = jax.lax.dot_general(
        w2_ref[...],
        h,
        dimension_numbers=(((1,), (1,)), ((), ())),
        preferred_element_type=jnp.float32,
    )
    o_ref[...] = (y + b2_ref[0]).astype(o_ref.dtype)


def _round_up(n, m):
    return ((n + m - 1) // m) * m


@functools.partial(jax.jit, static_argnames=("batch_tile",))
def simple_nn_forward(x, w1, b1, w2, b2, *, batch_tile=1024):
    """Fused fc1 -> ReLU -> fc2.

    x:  (B, d_in) float32
    w1: (d_in, hidden)   (transposed torch fc1.weight)
    b1: (hidden,)
    w2: (hidden, 1)      (transposed torch fc2.weight)
    b2: (1,)
    returns (B, 1)
    """
    B, d_in = x.shape
    hidden = w1.shape[1]
    dtype = x.dtype

    # --- zero-pad hidden to a full 128-lane row (padded lanes contribute 0) ---
    w1p = jnp.zeros((d_in, _HIDDEN_PAD), dtype).at[:, :hidden].set(w1.astype(dtype))
    b1p = jnp.zeros((1, _HIDDEN_PAD), dtype).at[:, :hidden].set(
        b1.reshape(1, -1).astype(dtype))
    w2p = jnp.zeros((1, _HIDDEN_PAD), dtype).at[:, :hidden].set(
        w2.reshape(1, -1).astype(dtype))
    b2s = b2.reshape((1,)).astype(dtype)

    # --- batch tiling: one big block for small B, lane-multiple tiles otherwise ---
    if B <= batch_tile:
        tile = _round_up(B, 8)        # single grid step; block == full padded array
        b_pad = tile
    else:
        assert batch_tile % 128 == 0, "batch_tile must be a multiple of 128"
        tile = batch_tile
        b_pad = _round_up(B, tile)

    x_pad = x if b_pad == B else jnp.pad(x, ((0, b_pad - B), (0, 0)))
    grid = (b_pad // tile,)

    out_row = pl.pallas_call(
        _mlp_kernel,
        out_shape=jax.ShapeDtypeStruct((1, b_pad), dtype),
        grid_spec=pltpu.PrefetchScalarGridSpec(
            num_scalar_prefetch=0,
            grid=grid,
            in_specs=[
                pl.BlockSpec((tile, d_in), lambda i: (i, 0)),         # x tile (streamed)
                pl.BlockSpec((d_in, _HIDDEN_PAD), lambda i: (0, 0)),  # W1 (resident)
                pl.BlockSpec((1, _HIDDEN_PAD), lambda i: (0, 0)),     # b1 (resident)
                pl.BlockSpec((1, _HIDDEN_PAD), lambda i: (0, 0)),     # w2 row (resident)
                pl.BlockSpec(memory_space=pltpu.MemorySpace.SMEM),    # b2 scalar in SMEM
            ],
            out_specs=pl.BlockSpec((1, tile), lambda i: (0, i)),      # lane-dense output
        ),
        compiler_params=pltpu.CompilerParams(
            dimension_semantics=("parallel",),
        ),
    )(x_pad, w1p, b1p, w2p, b2s)

    # (1, B_pad) row -> (B, 1) column: pure layout plumbing in the wrapper.
    return out_row.reshape(b_pad, 1)[:B]


def init_params(key, input_size, hidden=10, out=1, dtype=jnp.float32):
    """Deterministic init matching the shapes of SimpleNN(input_size)."""
    k1, k2, k3, k4 = jax.random.split(key, 4)
    # torch nn.Linear weight is (out, in); we keep (in, out) for x @ W.
    w1 = jax.random.normal(k1, (input_size, hidden), dtype) * 0.1
    b1 = jax.random.normal(k2, (hidden,), dtype) * 0.1
    w2 = jax.random.normal(k3, (hidden, out), dtype) * 0.1
    b2 = jax.random.normal(k4, (out,), dtype) * 0.1
    return w1, b1, w2, b2


def reference_forward(x, w1, b1, w2, b2):
    h = jnp.maximum(x @ w1 + b1, 0.0)
    return h @ w2 + b2


if __name__ == "__main__":
    key = jax.random.PRNGKey(0)
    kx_small, kx_big, kp = jax.random.split(key, 3)

    input_size = 32
    w1, b1, w2, b2 = init_params(kp, input_size)

    # Small batch: single-block (grid=(1,)) path.
    x_small = jax.random.normal(kx_small, (16, input_size), jnp.float32)
    out_small = jax.block_until_ready(simple_nn_forward(x_small, w1, b1, w2, b2))
    ref_small = reference_forward(x_small, w1, b1, w2, b2)
    assert out_small.shape == (16, 1)
    assert jnp.allclose(out_small, ref_small, atol=1e-4, rtol=1e-4), "small-batch mismatch"

    # Larger batch with an explicit small tile: exercises the tiled,
    # lane-dense-output path including batch padding (600 -> 768, grid=(3,)).
    x_big = jax.random.normal(kx_big, (600, input_size), jnp.float32)
    out_big = jax.block_until_ready(
        simple_nn_forward(x_big, w1, b1, w2, b2, batch_tile=256))
    ref_big = reference_forward(x_big, w1, b1, w2, b2)
    assert out_big.shape == (600, 1)
    assert jnp.allclose(out_big, ref_big, atol=1e-4, rtol=1e-4), "tiled-batch mismatch"

    print("KERNEL_OK")
</pallas_src>

<mosaic_0001>
module attributes {stable_mosaic.version = 11 : i64} {
  func.func @_mlp_kernel(%arg0: i32, %arg1: memref<16x32xf32, #tpu.memory_space<vmem>>, %arg2: memref<32x128xf32, #tpu.memory_space<vmem>>, %arg3: memref<1x128xf32, #tpu.memory_space<vmem>>, %arg4: memref<1x128xf32, #tpu.memory_space<vmem>>, %arg5: memref<1xf32, #tpu.memory_space<smem>>, %arg6: memref<1x16xf32, #tpu.memory_space<vmem>>) attributes {dimension_semantics = [#tpu.dimension_semantics<parallel>], iteration_bounds = array<i64: 1>, scalar_prefetch = 0 : i64, scratch_operands = 0 : i64, tpu.core_type = #tpu.core_type<tc>, window_params = [{transform_indices = @transform_0, window_bounds = array<i64: 16, 32>}, {pipeline_mode = #tpu.pipeline_mode<synchronous>, transform_indices = @transform_1, window_bounds = array<i64: 32, 128>}, {pipeline_mode = #tpu.pipeline_mode<synchronous>, transform_indices = @transform_2, window_bounds = array<i64: 1, 128>}, {pipeline_mode = #tpu.pipeline_mode<synchronous>, transform_indices = @transform_3, window_bounds = array<i64: 1, 128>}, {transform_indices = @transform_4, window_bounds = array<i64: 1>}, {transform_indices = @transform_5, window_bounds = array<i64: 1, 16>}]} {
    %c0 = arith.constant 0 : index
    %c0_0 = arith.constant 0 : index
    %0 = vector.load %arg1[%c0, %c0_0] : memref<16x32xf32, #tpu.memory_space<vmem>>, vector<16x32xf32>
    %c0_1 = arith.constant 0 : index
    %c0_2 = arith.constant 0 : index
    %1 = vector.load %arg2[%c0_1, %c0_2] : memref<32x128xf32, #tpu.memory_space<vmem>>, vector<32x128xf32>
    %cst = arith.constant dense<0.000000e+00> : vector<16x128xf32>
    %2 = tpu.matmul %0, %1, %cst {dimension_numbers = #tpu.dot_dimension_numbers<[1], [0], [0], [1], [0, 0, 1, 1], [], []>} : vector<16x32xf32>, vector<32x128xf32>, vector<16x128xf32> -> vector<16x128xf32>
    %c0_3 = arith.constant 0 : index
    %c0_4 = arith.constant 0 : index
    %3 = vector.load %arg3[%c0_3, %c0_4] : memref<1x128xf32, #tpu.memory_space<vmem>>, vector<1x128xf32>
    %4 = vector.broadcast %3 : vector<1x128xf32> to vector<16x128xf32>
    %5 = arith.addf %2, %4 : vector<16x128xf32>
    %cst_5 = arith.constant 0.000000e+00 : f32
    %6 = vector.broadcast %cst_5 : f32 to vector<16x128xf32>
    %7 = arith.maximumf %5, %6 : vector<16x128xf32>
    %c0_6 = arith.constant 0 : index
    %c0_7 = arith.constant 0 : index
    %8 = vector.load %arg4[%c0_6, %c0_7] : memref<1x128xf32, #tpu.memory_space<vmem>>, vector<1x128xf32>
    %cst_8 = arith.constant dense<0.000000e+00> : vector<1x16xf32>
    %9 = tpu.matmul %8, %7, %cst_8 {dimension_numbers = #tpu.dot_dimension_numbers<[1], [1], [0], [0], [0, 0, 1, 0], [], []>} : vector<1x128xf32>, vector<16x128xf32>, vector<1x16xf32> -> vector<1x16xf32>
    %c0_9 = arith.constant 0 : index
    %10 = memref.load %arg5[%c0_9] : memref<1xf32, #tpu.memory_space<smem>>
    %11 = vector.broadcast %10 : f32 to vector<1x16xf32>
    %12 = arith.addf %9, %11 : vector<1x16xf32>
    %c0_10 = arith.constant 0 : index
    %c0_11 = arith.constant 0 : index
    %13 = vector.load %arg6[%c0_10, %c0_11] : memref<1x16xf32, #tpu.memory_space<vmem>>, vector<1x16xf32>
    tpu.vector_store %arg6[%c0_10, %c0_11], %12 {strides = array<i32>} : memref<1x16xf32, #tpu.memory_space<vmem>>, vector<1x16xf32>,
    return
  }
  func.func @transform_0(%arg0: i32) -> (i32, i32) {
    %c0_i32 = arith.constant 0 : i32
    %c0_i32_0 = arith.constant 0 : i32
    return %arg0, %c0_i32 : i32, i32
  }
  func.func @transform_1(%arg0: i32) -> (i32, i32) {
    %c0_i32 = arith.constant 0 : i32
    %c0_i32_0 = arith.constant 0 : i32
    %c0_i32_1 = arith.constant 0 : i32
    return %c0_i32, %c0_i32_0 : i32, i32
  }
  func.func @transform_2(%arg0: i32) -> (i32, i32) {
    %c0_i32 = arith.constant 0 : i32
    %c0_i32_0 = arith.constant 0 : i32
    %c0_i32_1 = arith.constant 0 : i32
    return %c0_i32, %c0_i32_0 : i32, i32
  }
  func.func @transform_3(%arg0: i32) -> (i32, i32) {
    %c0_i32 = arith.constant 0 : i32
    %c0_i32_0 = arith.constant 0 : i32
    %c0_i32_1 = arith.constant 0 : i32
    return %c0_i32, %c0_i32_0 : i32, i32
  }
  func.func @transform_4(%arg0: i32) -> i32 {
    %c0_i32 = arith.constant 0 : i32
    %c0_i32_0 = arith.constant 0 : i32
    return %c0_i32 : i32
  }
  func.func @transform_5(%arg0: i32) -> (i32, i32) {
    %c0_i32 = arith.constant 0 : i32
    %c0_i32_0 = arith.constant 0 : i32
    return %c0_i32, %arg0 : i32, i32
  }
}

</mosaic_0001>

<bundles_post_ra>
// kernel: simple_nn_forward.1
= control target key start
LH: loop header
LB: loop body
LE: loop exit
PB: predicated region body
PF: predicated region fallthrough
CT: control target
= control target key end

     0   :  { %s200_s0 = inlined_call_operand.vmem [shape: f32[16,32], index: 0, kind: input, shape index: {}]   ;;  %s201_s1 = inlined_call_operand.vmem [shape: f32[32,128], index: 1, kind: input, shape index: {}]   ;;  %s202_s2 = inlined_call_operand.vmem [shape: f32[1,128], index: 2, kind: input, shape index: {}]   ;;  %s203_s3 = inlined_call_operand.vmem [shape: f32[1,128], index: 3, kind: input, shape index: {}]   ;;  %s204_s4 = inlined_call_operand.<no memory space> [shape: f32[1], index: 4, kind: input, shape index: {}]   ;;  %s205_s5 = inlined_call_operand.hbm [shape: f32[1,16], index: 5, kind: output, shape index: {}]  }
   0x1   :  { %v27_v0 = vld [vmem:[%s201_s1 + $0x18] sm:$0xff]  ;;  %v26_v1 = vld [vmem:[%s201_s1 + $0x10] sm:$0xff]  ;;  %v25_v2 = vld [vmem:[%s201_s1 + $0x8] sm:$0xff] }
   0x2   :  { %107 = vmatpush.msra.mxu2 %v27_v0  ;;  %51 = vmatpush.msra.mxu0 %v27_v0 }
   0x3   :  { %11 = vsyncpa [#allocation4], 0  ;;  %v24_v3 = vld [vmem:[%s201_s1] sm:$0xff]  ;;  %v23_v4 = vld [vmem:[%s200_s0 + $0x8] sm:$0xff]  ;;  %vm32_vm0 = vcmask 261120   ;;  %v66_v14 = vstv %s204_s4  ;;  %s139_s9 = smov [#allocation3]  }
   0x4   :  { %108 = vmatpush.msra.mxu2 %v26_v1  ;;  %52 = vmatpush.msra.mxu0 %v26_v1  ;;  %v22_v5 = vld [vmem:[%s200_s0] sm:$0xff]  ;;  %s94_s10 = sshll.u32 %s139_s9, 4  ;;  %s96_s12 = sshll.u32 %s205_s5, 4  ;;  %vm87_vm1 = vcmask 122880   ;;  %s95_s10 = int_to_ptr.vmem [resolvable:$true] %s94_s10  ;;  %s97_s12 = int_to_ptr.hbm [resolvable:$true] %s96_s12 }
   0x5   :  { %v112_v6 = vld [vmem:[%s202_s2] ss:$0 sm:$0xff] }
   0x6   :  { %109 = vmatpush.msra.mxu2 %v25_v2  ;;  %53 = vmatpush.msra.mxu0 %v25_v2  ;;  %v64_v13 = vld [vmem:[%s203_s3] sm:$0x1] }
   0x8   :  { %110 = vmatpush.msra.mxu2 %v24_v3  ;;  %54 = vmatpush.msra.mxu0 %v24_v3 }
   0x9   :  { %106 = vmatmul.msk.f32.vlgmr.msra.gmra.mxu2 %vm32_vm0, %v23_v4  ;;  %105 = vmatmul.msk.f32.vlgmr.msra.gmra.mxu0 %vm32_vm0, %v22_v5 }
  0x86   :  { %v56_v7 = vpop.f32.mrf.mxu0 }
  0x87   :  { %v57_v9 = vadd.f32 %v112_v6, %v56_v7 }
  0x89   :  { %v62_v12 = vmax.f32 %v57_v9, 0.0 }
  0x8c   :  { %v59_v8 = vpop.f32.mrf.mxu2 }
  0x8d   :  { %v60_v10 = vadd.f32 %v112_v6, %v59_v8 }
  0x8f   :  { %v63_v11 = vmax.f32 %v60_v10, 0.0 }
  0x91   :  { %81 = vmatpush.xpose.msra.mxu1 %v63_v11 }
  0x95   :  { %82 = vmatpush.xpose.msra.mxu1 %v62_v12 }
  0x98   :  { %83 = vmatmul.f32.vlgmr.msra.gmra.mxu1 %v64_v13 }
 0x115   :  { %v84_v15 = vpop.f32.mrf.mxu1 }
 0x116   :  { %v85_v16 = vadd.f32 %v84_v15, %v66_v14 }
 0x118   :  { %88 = vst.msk [vmem:[#allocation3] sm:$0x1] %vm87_vm1, %v85_v16 }
 0x119   :  { %99 = dma.vmem_to_hbm [thread:$0]  %s95_s10, 16, %s97_s12, [#allocation4]  }
 0x11a   :  { %137 = dma.done.wait [#allocation4], 16  }
 0x11b   :  { %138 = vsyncadd [#allocation4], 4294967280 }
 0x11c   :  { %104 = vsyncpa [#allocation4], 1 }

</bundles_post_ra>
